<compile_context>
chip_gen: v7x
topology: tpu7x:2x2x1
jax: 0.10.0
libtpu: 0.0.40
codegen_flags: <defaults>
</compile_context>

<pallas_src>
import numpy as np
import jax
import jax.numpy as jnp
from jax.experimental import pallas as pl
from jax.experimental.pallas import tpu as pltpu

_LANE = 128


def _round_up(x: int, m: int) -> int:
    return ((x + m - 1) // m) * m


def _tpu_tuning():
    """Return (target_step_bytes, vmem_limit_bytes) per TPU generation."""
    try:
        kind = jax.devices()[0].device_kind.lower()
    except Exception:
        kind = ""
    if "v5" in kind and ("lite" in kind or "5e" in kind):
        # v5e: 16 MiB scoped-VMEM default, ~820 GB/s -> small steps cost little.
        return 2 * 1024 * 1024, 64 << 20
    if "v6" in kind:
        # v6e: ~1.4 TB/s, 128 MiB physical VMEM -> bigger steps, plenty of headroom.
        return 8 * 1024 * 1024, 64 << 20
    if "7" in kind:
        # v7x: ~3.2 TB/s but only 64 MiB physical VMEM -> big steps, modest limit.
        return 8 * 1024 * 1024, 48 << 20
    # Unknown chip: conservative defaults that also fit v7x's 64 MiB physical VMEM.
    return 4 * 1024 * 1024, 48 << 20


def _make_feats_kernel(factor: int):
    def kernel(feats_ref, out_ref):
        # Nearest-neighbor replication, lane-dense (TN, factor*C) layout.
        # NOTE: jnp.tile along lanes uses the XLU; this hides under the DMA on
        # v5e/v6e. If it ever binds on v7x for tiny C, hand-lower to per-vreg
        # splats -- left as-is because the op stays HBM-bound at C>=32.
        out_ref[...] = jnp.tile(feats_ref[...], (1, factor))
    return kernel


def sparse_subdivide(feats: jax.Array, coords: jax.Array,
                     target_step_bytes: int | None = None,
                     vmem_limit_bytes: int | None = None):
    """Pallas implementation of SparseSubdivide.forward.

    feats  : (N, C) float array
    coords : (N, 1+DIM) int array
    returns (new_feats (N*2**DIM, C), new_coords (N*2**DIM, 1+DIM))
    """
    N, C = feats.shape
    dim = coords.shape[-1] - 1
    factor = 2 ** dim
    itemsize = feats.dtype.itemsize

    auto_step, auto_vmem = _tpu_tuning()
    if target_step_bytes is None:
        target_step_bytes = auto_step
    if vmem_limit_bytes is None:
        vmem_limit_bytes = auto_vmem

    # ------------- coords: tiny int32 traffic, handled in plain JAX -------------
    # Corner offsets of the unit cube in lexicographic order (== torch.nonzero order).
    grids = np.meshgrid(*([np.arange(2, dtype=np.int32)] * dim), indexing="ij")
    corners = np.stack(grids, axis=-1).reshape(factor, dim)
    offsets = np.concatenate([np.zeros((factor, 1), np.int32), corners], axis=-1)
    scale = np.concatenate([np.ones((1,), np.int32), np.full((dim,), 2, np.int32)])
    scaled = coords.astype(jnp.int32) * jnp.asarray(scale)[None, :]
    new_coords = (scaled[:, None, :] + jnp.asarray(offsets)[None, :, :]
                  ).reshape(N * factor, dim + 1)

    # ------------- feats: fused replication kernel -------------
    sublane = max(8, 32 // max(1, itemsize))          # 8 for f32, 16 for bf16, 32 for int8
    # Lane-padded VMEM widths: every sub-128-lane buffer occupies full 128-lane tiles.
    w_in = _round_up(C, _LANE)
    w_out = _round_up(factor * C, _LANE)
    vmem_per_row = 2 * (w_in + w_out) * itemsize      # double-buffered input + output
    hbm_per_row = (1 + factor) * C * itemsize         # actual HBM traffic per input row

    vmem_budget = int(vmem_limit_bytes * 0.75)        # headroom for compiler scratch
    tile_vmem = max(sublane, vmem_budget // vmem_per_row)
    tile_hbm = max(sublane, target_step_bytes // hbm_per_row)
    tile_n = max(sublane, (min(tile_vmem, tile_hbm) // sublane) * sublane)

    n_ceil = _round_up(max(N, 1), sublane)
    num_blocks = pl.cdiv(n_ceil, tile_n)
    if num_blocks == 1 and n_ceil >= 2 * sublane:
        num_blocks = 2                                # keep both v7x TensorCores busy
    # Rebalance tile size across the chosen number of blocks (never grows tile_n).
    tile_n = _round_up(pl.cdiv(n_ceil, num_blocks), sublane)
    num_blocks = pl.cdiv(n_ceil, tile_n)
    n_pad = num_blocks * tile_n

    feats_in = feats
    if n_pad != N:
        feats_in = jnp.pad(feats, ((0, n_pad - N), (0, 0)))

    cost = pl.CostEstimate(flops=0, transcendentals=0,
                           bytes_accessed=int(N * hbm_per_row))

    feats_out = pl.pallas_call(
        _make_feats_kernel(factor),
        out_shape=jax.ShapeDtypeStruct((n_pad, factor * C), feats.dtype),
        grid=(num_blocks,),
        in_specs=[pl.BlockSpec((tile_n, C), lambda i: (i, 0))],
        # Lane-dense output: unmasked stores when factor*C % 128 == 0; otherwise the
        # store path falls back to masked partial stores (still correct, just slower).
        out_specs=pl.BlockSpec((tile_n, factor * C), lambda i: (i, 0)),
        compiler_params=pltpu.CompilerParams(
            dimension_semantics=("parallel",),
            vmem_limit_bytes=int(vmem_limit_bytes),
        ),
        cost_estimate=cost,
    )(feats_in)

    # flatten(0, 1): row-major (N, factor*C) == (N, factor, C), so the reshape is free.
    new_feats = feats_out[:N].reshape(N * factor, C)
    return new_feats, new_coords


def _reference(feats, coords):
    """Pure-JAX reference mirroring the PyTorch module."""
    N, C = feats.shape
    dim = coords.shape[-1] - 1
    factor = 2 ** dim
    grids = jnp.meshgrid(*([jnp.arange(2, dtype=jnp.int32)] * dim), indexing="ij")
    corners = jnp.stack(grids, axis=-1).reshape(factor, dim)
    offsets = jnp.concatenate([jnp.zeros((factor, 1), jnp.int32), corners], axis=-1)
    nc = coords.astype(jnp.int32)
    nc = nc.at[:, 1:].multiply(2)
    new_coords = (nc[:, None, :] + offsets[None, :, :]).reshape(N * factor, dim + 1)
    new_feats = jnp.broadcast_to(feats[:, None, :], (N, factor, C)).reshape(N * factor, C)
    return new_feats, new_coords


if __name__ == "__main__":
    key = jax.random.PRNGKey(0)
    k1, k2, k3 = jax.random.split(key, 3)

    N, C, DIM = 16, 32, 3  # 16 active voxels, 32 channels, 3-D sparse grid
    feats = jax.random.normal(k1, (N, C), dtype=jnp.float32)
    batch_idx = jax.random.randint(k2, (N, 1), 0, 2, dtype=jnp.int32)
    spatial = jax.random.randint(k3, (N, DIM), 0, 16, dtype=jnp.int32)
    coords = jnp.concatenate([batch_idx, spatial], axis=-1)  # (N, 1+DIM) int32

    out_feats, out_coords = sparse_subdivide(feats, coords)
    jax.block_until_ready(out_feats)
    jax.block_until_ready(out_coords)

    ref_feats, ref_coords = _reference(feats, coords)
    assert out_feats.shape == (N * 2 ** DIM, C)
    assert out_coords.shape == (N * 2 ** DIM, DIM + 1)
    assert jnp.array_equal(out_coords, ref_coords)
    assert jnp.allclose(out_feats, ref_feats)

    # also exercise a ragged / larger N to validate tail handling and multi-block grid
    N2 = 1000
    feats2 = jax.random.normal(k1, (N2, C), dtype=jnp.float32)
    coords2 = jnp.concatenate(
        [jax.random.randint(k2, (N2, 1), 0, 2, dtype=jnp.int32),
         jax.random.randint(k3, (N2, DIM), 0, 64, dtype=jnp.int32)], axis=-1)
    of2, oc2 = sparse_subdivide(feats2, coords2)
    jax.block_until_ready(of2)
    rf2, rc2 = _reference(feats2, coords2)
    assert jnp.array_equal(oc2, rc2)
    assert jnp.allclose(of2, rf2)

    # TODO(synk): SparseTensor bookkeeping (_scale *= 2, _spatial_cache passthrough) is
    # host-side metadata with no tensor math, so it is left to the caller.
    print("KERNEL_OK")
</pallas_src>

<mosaic_0001>
module attributes {stable_mosaic.version = 11 : i64} {
  func.func @kernel(%arg0: i32, %arg1: memref<8x32xf32, #tpu.memory_space<vmem>>, %arg2: memref<8x256xf32, #tpu.memory_space<vmem>>) attributes {dimension_semantics = [#tpu.dimension_semantics<parallel>], iteration_bounds = array<i64: 2>, scalar_prefetch = 0 : i64, scratch_operands = 0 : i64, tpu.core_type = #tpu.core_type<tc>, window_params = [{transform_indices = @transform_0, window_bounds = array<i64: 8, 32>}, {transform_indices = @transform_1, window_bounds = array<i64: 8, 256>}]} {
    %c0 = arith.constant 0 : index
    %c0_0 = arith.constant 0 : index
    %0 = vector.load %arg1[%c0, %c0_0] : memref<8x32xf32, #tpu.memory_space<vmem>>, vector<8x32xf32>
    %1 = tpu.concatenate %0, %0, %0, %0, %0, %0, %0, %0 in 1 : vector<8x32xf32>, vector<8x32xf32>, vector<8x32xf32>, vector<8x32xf32>, vector<8x32xf32>, vector<8x32xf32>, vector<8x32xf32>, vector<8x32xf32> -> vector<8x256xf32>
    %c0_1 = arith.constant 0 : index
    %c0_2 = arith.constant 0 : index
    %2 = vector.load %arg2[%c0_1, %c0_2] : memref<8x256xf32, #tpu.memory_space<vmem>>, vector<8x256xf32>
    tpu.vector_store %arg2[%c0_1, %c0_2], %1 {strides = array<i32>} : memref<8x256xf32, #tpu.memory_space<vmem>>, vector<8x256xf32>,
    return
  }
  func.func @transform_0(%arg0: i32) -> (i32, i32) {
    %c0_i32 = arith.constant 0 : i32
    %c0_i32_0 = arith.constant 0 : i32
    return %arg0, %c0_i32 : i32, i32
  }
  func.func @transform_1(%arg0: i32) -> (i32, i32) {
    %c0_i32 = arith.constant 0 : i32
    %c0_i32_0 = arith.constant 0 : i32
    return %arg0, %c0_i32 : i32, i32
  }
}

</mosaic_0001>

<bundles_post_ra>
// kernel: tpu_custom_call.1
= control target key start
LH: loop header
LB: loop body
LE: loop exit
PB: predicated region body
PF: predicated region fallthrough
CT: control target
= control target key end

     0   :  { %6 = vsyncpa [#allocation3], 0  ;;  %s574_s0 = inlined_call_operand.hbm [shape: f32[16,32], index: 0, kind: input, shape index: {}]   ;;  %s575_s1 = inlined_call_operand.hbm [shape: f32[16,256], index: 1, kind: output, shape index: {}]  }
   0x1   :  { %8 = vsyncpa [#allocation3 + $0x1], 0 }
   0x2   :  { %9 = vsyncpa [#allocation4], 0 }
   0x3   :  { %11 = vsyncpa [#allocation4 + $0x1], 0  ;;  %s412_s6 = smov 0   ;;  %s414_s7 = smov 0  }
   0x4   :  { %s416_s8 = smov 0   ;;  %s418_s9 = smov 0  }
   0x5 LB: > { %s433_s10 = sadd.s32 4294967295, %s395_s9   ;;  %s236_s11 = sadd.s32 4294967294, %s395_s9   ;;  %s395_s9 = sphi %s418_s9, %s590_s9   ;;  %s391_s8 = sphi %s416_s8, %s589_s8   ;;  %s387_s7 = sphi %s414_s7, %s588_s7   ;;  %s383_s6 = sphi %s412_s6, %s587_s6  }
   0x6   : > { %s437_s12 = sadd.s32 1, %s395_s9   ;;  %s24_s13 = sadd.s32 1, %s391_s8 }
   0x7   : > { %s21_s14 = ssub.s32 %s395_s9, %s437_s12  ;;  %p31_p0 = scmp.ne.s32.totalorder %s391_s8, %s387_s7 }
   0x8   : > { %p22_p1 = scmp.eq.s32.totalorder %s21_s14, 0  ;;  %p32_p2 = scmp.eq.s32.totalorder %s395_s9, 0 }
   0x9   : > { %p37_p3 = scmp.ne.s32.totalorder %s387_s7, %s383_s6  ;;  %p38_p4 = scmp.eq.s32.totalorder %s433_s10, 0 }
   0xa   : > { %s449_s15 = scalar_select %p22_p1, %s391_s8, %s24_s13  }
   0xb   : > { %p451_p5 = por %p32_p2, %p31_p0  ;;  %p455_p6 = por %p38_p4, %p37_p3 }
   0xc   : > { %p61_p7 = scmp.eq.s32.totalorder %s433_s10, 1  ;;  %p67_p8 = scmp.eq.s32.totalorder %s236_s11, 1 }
   0xd   : > { %p262_p10 = scmp.lt.s32.totalorder %s395_s9, 2  ;;  %s87_s20 = sand.u32 1, %s391_s8  }
   0xe   : > { %p462_p11 = por %p61_p7, %p31_p0  ;;  %p466_p12 = por %p67_p8, %p37_p3 }
   0xf   : > { %s240_s21 = sshll.u32 %s395_s9, 7  ;;  %s239_s22 = sshll.u32 %s87_s20, 3 }
  0x10   : > { %s579_s18 = scalar_select %p462_p11, 1, 0 }
  0x11   : > { %s580_s19 = scalar_select %p466_p12, 1, 0 }
  0x12   : > { %s475_s25 = scalar_lea.hbm %s574_s0, %s240_s21  ;;  %s91_s26 = scalar_lea.vmem [#allocation2], %s239_s22 }
  0x13   : > { %s98_s27 = sshll.u32 %s91_s26, 4  ;;  %p479_p13 = pnand %p262_p10, %p451_p5  ;;  %s483_s27 = int_to_ptr.vmem [resolvable:$true] %s98_s27 }
  0x14   : > { %s88_s29 = scalar_lea.sflag [#allocation3], %s87_s20  ;;  %s299_s30 = scalar_lea.hbm %s475_s25, 128 }
  0x15   : > { %p300_p2 = scmp.ne.s32.totalorder %s475_s25, %s299_s30  ;;  %p301_p3 = pneg %p479_p13 }
  0x16   : > { %s304_s4 = scalar_lea.hbm %s574_s0, 256  ;;  %p305_p5 = scmp.lt.u32.totalorder %s475_s25, %s574_s0 }
  0x17   : > { %p302_p4 = pnand %p301_p3, %p300_p2  ;;  %p306_p8 = scmp.lt.u32.totalorder %s304_s4, %s299_s30 }
  0x18   : > { %p308_p9 = scmp.lt.u32.totalorder %s299_s30, %s475_s25 }
  0x19   : > { %p303_p7 = pneg %p302_p4  ;;  %p307_p10 = por %p306_p8, %p305_p5 }
  0x1b   : > { %p309_p0 = por %p308_p9, %p307_p10 }
  0x1d   : > { %p310_p1 = pnand %p309_p0, %p303_p7 }
  0x1f   : > { %313 = shalt.err (!%p310_p1)
}
  0x20   : > { %s314_s13 = scalar_lea.vmem %s483_s27, 128  ;;  %s397_s14 = smov [#allocation2]  }
  0x21   : > { %p315_p2 = scmp.ne.s32.totalorder %s483_s27, %s314_s13  ;;  %s319_s16 = sshll.u32 %s397_s14, 4  ;;  %s320_s16 = int_to_ptr.vmem [resolvable:$false] %s319_s16 }
  0x22   : > { %s321_s20 = scalar_lea.vmem %s320_s16, 256  ;;  %p322_p11 = scmp.lt.s32.totalorder %s483_s27, %s320_s16 }
  0x23   : > { %p317_p4 = pnand %p315_p2, %p301_p3  ;;  %p323_p5 = scmp.lt.s32.totalorder %s321_s20, %s314_s13 }
  0x25   : > { %p318_p12 = pneg %p317_p4  ;;  %p324_p8 = por %p323_p5, %p322_p11 }
  0x27   : > { %p325_p9 = pnand %p324_p8, %p318_p12 }
  0x29   : > { %328 = shalt.err (!%p325_p9)
}
  0x2a   : > { %257 = dma.hbm_to_vmem [thread:$0]  (!%p479_p13), %s475_s25, 128, %s483_s27, %s88_s29  }
  0x2b   : > { %p582_p0 = scmp.lt.s32.totalorder %s395_s9, 3  ;;  %p583_p1 = scmp.ge.s32.totalorder %s395_s9, 1 }
  0x2d   : > { %p104_p3 = pnand %p583_p1, %p582_p0 }
  0x2e   : > { %s517_s21 = sand.u32 (!%p104_p3), 1, %s387_s7  }
  0x2f   : > { %107 = sbr.rel (%p104_p3) target bundleno = 191 (0xbf), region = 24  ;;  %s242_s22 = sshll.u32 (!%p104_p3), %s517_s21, 3 }
  0x30   : > { %s110_s23 = scalar_lea.sflag (!%p104_p3), [#allocation3], %s517_s21  ;;  %s113_s24 = scalar_lea.vmem (!%p104_p3), [#allocation2], %s242_s22 }
  0x36   : > { %374 = dma.done.wait (%p455_p6), %s110_s23, 128  }
  0x37   : > { %376 = vsyncadd (%p455_p6), %s110_s23, 4294967168  ;;  %v132_v0 = vld [vmem:[%s113_s24] sm:$0xff]  ;;  %s398_s25 = smov 32   ;;  %s399_s26 = smov 96   ;;  %vm143_vm0 = vcmask 261120   ;;  %vm145_vm1 = vcmask 523264  }
  0x38   : > { %134 = vrot.lane.b32.xlu0 %v132_v0, %s398_s25  ;;  %140 = vrot.lane.b32.xlu1 %v132_v0, %s399_s26  ;;  %s400_s27 = smov 64   ;;  %s243_s28 = sshll.u32 %s517_s21, 4  ;;  %vm147_vm2 = vcmask 785408  }
  0x39   : > { %s131_s29 = scalar_lea.vmem [#allocation5], %s243_s28  ;;  %s249_s2 = sshll.u32 %s433_s10, 8 }
  0x3a   : > { %s166_s30 = sshll.u32 %s131_s29, 4  ;;  %s530_s4 = scalar_lea.hbm %s575_s1, %s249_s2  ;;  %s532_s30 = int_to_ptr.vmem [resolvable:$true] %s166_s30 }
  0x3b   : > { %s152_s5 = scalar_lea.sflag [#allocation4], %s517_s21  ;;  %s329_s10 = scalar_lea.vmem %s532_s30, 256 }
  0x3c   : > { %137 = vrot.lane.b32.xlu0 %v132_v0, %s400_s27  ;;  %p330_p6 = scmp.ne.s32.totalorder %s532_s30, %s329_s10  ;;  %p584_p11 = scmp.ne.s32.totalorder %s579_s18, 0 }
  0x3d   : > { %s401_s11 = smov [#allocation5]  }
  0x3e   : > { %p331_p12 = pnand %p330_p6, %p584_p11  ;;  %s333_s13 = sshll.u32 %s401_s11, 4  ;;  %s334_s13 = int_to_ptr.vmem [resolvable:$false] %s333_s13 }
  0x3f   : > { %s335_s14 = scalar_lea.vmem %s334_s13, 512  ;;  %p336_p7 = scmp.lt.s32.totalorder %s532_s30, %s334_s13 }
  0x40   : > { %p332_p13 = pneg %p331_p12  ;;  %p337_p10 = scmp.lt.s32.totalorder %s335_s14, %s329_s10 }
  0x42   : > { %p338_p2 = por %p337_p10, %p336_p7 }
  0x44   : > { %p339_p4 = pnand %p338_p2, %p332_p13 }
  0xaa   : > { %v135_v1 = vpop.permute.xlu0 %134  ;;  %v141_v2 = vpop.permute.xlu1 %140 }
  0xab   : > { %v144_v3 = vsel %vm143_vm0, %v132_v0, %v135_v1 }
  0xae   : > { %v138_v4 = vpop.permute.xlu0 %137 }
  0xaf   : > { %v146_v5 = vsel %vm145_vm1, %v144_v3, %v138_v4 }
  0xb0   : > { %v148_v6 = vsel %vm147_vm2, %v146_v5, %v141_v2 }
  0xb1   : > { %149 = vst [vmem:[%s131_s29] sm:$0xff] %v148_v6  ;;  %150 = vst [vmem:[%s131_s29 + $0x8] sm:$0xff] %v148_v6 }
  0xb2   : > { %342 = shalt.err (!%p339_p4)
}
  0xb3   : > { %s343_s16 = scalar_lea.hbm %s530_s4, 256  ;;  %s347_s22 = scalar_lea.hbm %s575_s1, 512 }
  0xb4   : > { %p344_p5 = scmp.ne.s32.totalorder %s530_s4, %s343_s16  ;;  %p348_p0 = scmp.lt.u32.totalorder %s530_s4, %s575_s1 }
  0xb5   : > { %p349_p1 = scmp.lt.u32.totalorder %s347_s22, %s343_s16  ;;  %p351_p6 = scmp.lt.u32.totalorder %s343_s16, %s530_s4 }
  0xb6   : > { %p345_p8 = pnand %p344_p5, %p584_p11 }
  0xb7   : > { %p350_p3 = por %p349_p1, %p348_p0 }
  0xb8   : > { %p346_p9 = pneg %p345_p8 }
  0xb9   : > { %p352_p12 = por %p351_p6, %p350_p3 }
  0xbb   : > { %p353_p13 = pnand %p352_p12, %p346_p9 }
  0xbd   : > { %356 = shalt.err (!%p353_p13)
}
  0xbe   : > { %252 = dma.vmem_to_hbm [thread:$0]  (%p584_p11), %s532_s30, 256, %s530_s4, %s152_s5  }
  0xbf PF: > { %s178_s25 = sand.u32 1, %s383_s6   ;;  %p585_p7 = scmp.ne.s32.totalorder %s580_s19, 0 }
  0xc0   : > { %p586_p10 = scmp.ge.s32.totalorder %s395_s9, 2  ;;  %s179_s26 = scalar_lea.sflag [#allocation4], %s178_s25 }
  0xc2   : > { %p259_p2 = pnand %p586_p10, %p585_p7 }
  0xc4   : > { %378 = dma.done.wait (!%p259_p2), %s179_s26, 256  }
  0xc5   : > { %380 = vsyncadd (!%p259_p2), %s179_s26, 4294967040  ;;  %p14_p4 = scmp.ge.s32.totalorder %s437_s12, 4   ;;  %s587_s6 = smov %s387_s7 }
  0xc6   : > { %s588_s7 = smov %s391_s8  ;;  %s589_s8 = smov %s449_s15 }
  0xc7   : > { %s590_s9 = smov %s437_s12  ;;  %16 = sbr.rel (!%p14_p4) target bundleno = 5 (0x5), region = 69 }
  0xce   :  { %184 = vsyncpa [#allocation3], 1 }
  0xcf   :  { %186 = vsyncpa [#allocation3 + $0x1], 1 }
  0xd0   :  { %187 = vsyncpa [#allocation4], 1 }
  0xd1   :  { %189 = vsyncpa [#allocation4 + $0x1], 1 }

</bundles_post_ra>
